<compile_context>
chip_gen: v5e
topology: v5e:2x2
jax: 0.10.0
libtpu: 0.0.40
codegen_flags: <defaults>
</compile_context>

<pallas_src>
import jax
import jax.numpy as jnp
from jax.experimental import pallas as pl
from jax.experimental.pallas import tpu as pltpu


def _round_up(x, m):
    return ((x + m - 1) // m) * m


def _round_down(x, m):
    return (x // m) * m


def _make_kernel(n_terms):
    """Kernel computing sum_i a_i @ w_i + bias for n_terms (act, weight) pairs."""

    def kernel(*refs):
        a_refs = refs[:n_terms]
        w_refs = refs[n_terms:2 * n_terms]
        b_ref = refs[2 * n_terms]
        out_ref = refs[2 * n_terms + 1]

        # K-stacked accumulation: all partial matmuls land in one f32
        # accumulator; the pre-summed bias is added exactly once.
        acc = jnp.dot(a_refs[0][...], w_refs[0][...],
                      preferred_element_type=jnp.float32)
        for a_ref, w_ref in zip(a_refs[1:], w_refs[1:]):
            acc += jnp.dot(a_ref[...], w_ref[...],
                           preferred_element_type=jnp.float32)
        out_ref[...] = (acc + b_ref[...]).astype(out_ref.dtype)

    return kernel


def _vmem_budget_bytes():
    """Per-core VMEM budget with headroom for compiler scratch / DMA metadata."""
    cap = None
    try:
        info = pltpu.get_tpu_info()
        cap = getattr(info, "vmem_capacity_bytes", None)
    except Exception:
        cap = None
    if not cap:
        cap = 64 << 20  # conservative default: v7x per-TensorCore physical VMEM
    cap = int(cap)
    # ~40% headroom; hard cap ~40 MiB on 64 MiB parts (v7x), larger on v5e/v6e.
    return min(int(cap * 0.6), (40 << 20) if cap <= (64 << 20) else (96 << 20))


def cluster_aided_classifier_forward(
        x, z, p, params, *,
        compute_dtype=jnp.bfloat16,
        out_dtype=jnp.float32,
        use_pallas=None,
        max_batch_tile=None):
    """Pallas implementation of ClusterAidedClassifier.forward.

    x : [B, feat_dim], z : [B, feat_dim], p : [B, num_class] or None
    params: dict with 'wx' [feat_dim, C], 'bx' [1, C],
                      'wzp' [zp_dim, C], 'bzp' [1, C]  (weights pre-transposed)
    compute_dtype: dtype for activations/weights on the MXU (default bf16);
                   accumulation, bias add and (by default) the output stay f32.
    use_pallas: None = auto (tiny problems take a fused XLA path).
    max_batch_tile: optional cap on the batch tile (mainly for testing).
    returns logits [B, C]
    """
    wx, bx = params["wx"], params["bx"]
    wzp, bzp = params["wzp"], params["bzp"]

    B, feat_dim = x.shape
    num_class = wx.shape[1]

    # Split wzp once (static slices) so z and p are never concatenated in HBM.
    if p is None:
        acts = [x, z]
        weights = [wx, wzp]
    else:
        assert wzp.shape[0] == feat_dim + p.shape[1]
        acts = [x, z, p]
        weights = [wx, wzp[:feat_dim], wzp[feat_dim:]]

    # Pre-summed single bias (one broadcast add, always f32).
    bias = (bx + bzp).astype(jnp.float32)

    if compute_dtype is not None:
        acts = [a.astype(compute_dtype) for a in acts]
        weights = [w.astype(compute_dtype) for w in weights]

    k_dims = [a.shape[1] for a in acts]
    sum_k = sum(k_dims)

    # Small-shape dispatch: below ~2 MFLOP the pallas_call fixed cost dominates,
    # so return the fused XLA expression instead of launching a kernel.
    if use_pallas is None:
        use_pallas = (2 * B * sum_k * num_class) >= (1 << 21)
    if not use_pallas:
        acc = jnp.dot(acts[0], weights[0], preferred_element_type=jnp.float32)
        for a, w in zip(acts[1:], weights[1:]):
            acc = acc + jnp.dot(a, w, preferred_element_type=jnp.float32)
        return (acc + bias).astype(out_dtype)

    act_itemsize = jnp.dtype(acts[0].dtype).itemsize
    out_itemsize = jnp.dtype(out_dtype).itemsize
    # Sublane packing granularity for the batch-tiled blocks (bf16 packs 16/sublane-pair).
    gran = {4: 8, 2: 16, 1: 32}.get(act_itemsize, 8)

    # Resident (single VMEM copy) weights + bias.
    resident_bytes = sum(k * num_class * act_itemsize for k in k_dims) + num_class * 4

    budget = _vmem_budget_bytes()
    per_row_bytes = sum_k * act_itemsize + num_class * out_itemsize

    # Largest batch tile that fits the VMEM remaining after the resident weights
    # (x2 for the double-buffered activation/output windows), up to 2048 rows.
    avail = max(budget - resident_bytes, 4 << 20)
    tb = _round_down(avail // (2 * per_row_bytes), gran)
    tb = max(gran, min(tb, 2048))
    tb = min(tb, _round_up(B, gran))
    # Keep >= 2 grid steps (when the batch allows) so ("parallel",) can split
    # the batch axis across both TensorCores on megacore parts.
    if B >= 2 * gran:
        tb = min(tb, _round_up((B + 1) // 2, gran))
    if max_batch_tile is not None:
        tb = max(gran, min(tb, _round_up(max_batch_tile, gran)))

    # cdiv grid: the partial last batch block is masked by Pallas -- no HBM-side
    # activation padding, no post-slice of the output.
    grid = (pl.cdiv(B, tb),)

    n = len(acts)
    act_specs = [pl.BlockSpec((tb, k), lambda i: (i, 0)) for k in k_dims]
    # Whole weights / bias resident in VMEM, single buffer, DMA'd once.
    weight_specs = [pl.BlockSpec(memory_space=pltpu.MemorySpace.VMEM)
                    for _ in weights]
    bias_spec = pl.BlockSpec(memory_space=pltpu.MemorySpace.VMEM)
    in_specs = act_specs + weight_specs + [bias_spec]
    # Output last dim == full num_class (no 128-pad, no slice-copy afterwards).
    out_spec = pl.BlockSpec((tb, num_class), lambda i: (i, 0))

    vmem_need = resident_bytes + 2 * tb * per_row_bytes
    vmem_limit = int(min(budget, max(16 << 20, vmem_need * 5 // 4 + (2 << 20))))

    flops = 2 * B * sum_k * num_class
    bytes_accessed = int(
        sum(int(a.size) * a.dtype.itemsize for a in acts)
        + sum(int(w.size) * w.dtype.itemsize for w in weights)
        + int(bias.size) * 4
        + B * num_class * out_itemsize)

    return pl.pallas_call(
        _make_kernel(n),
        out_shape=jax.ShapeDtypeStruct((B, num_class), out_dtype),
        grid=grid,
        in_specs=in_specs,
        out_specs=out_spec,
        compiler_params=pltpu.CompilerParams(
            dimension_semantics=("parallel",),
            vmem_limit_bytes=vmem_limit,
        ),
        cost_estimate=pl.CostEstimate(
            flops=flops, transcendentals=0, bytes_accessed=bytes_accessed),
    )(*acts, *weights, bias)


def init_params(key, model_type, feat_dim, num_class, dtype=jnp.float32):
    assert model_type in ("XZP", "XZ")
    zp_dim = {"XZ": feat_dim, "XZP": feat_dim + num_class}[model_type]
    k1, k2, k3, k4 = jax.random.split(key, 4)
    # Deterministic synthetic init (roughly Kaiming-uniform scale like nn.Linear).
    sx = 1.0 / jnp.sqrt(feat_dim)
    szp = 1.0 / jnp.sqrt(zp_dim)
    return {
        "wx": jax.random.uniform(k1, (feat_dim, num_class), dtype, -sx, sx),
        "bx": jax.random.uniform(k2, (1, num_class), dtype, -sx, sx),
        "wzp": jax.random.uniform(k3, (zp_dim, num_class), dtype, -szp, szp),
        "bzp": jax.random.uniform(k4, (1, num_class), dtype, -szp, szp),
    }


def _reference(x, z, p, params):
    zp = z if p is None else jnp.concatenate([z, p], axis=1)
    return (x @ params["wx"] + params["bx"]) + (zp @ params["wzp"] + params["bzp"])


if __name__ == "__main__":
    key = jax.random.PRNGKey(0)
    kx, kz, kp, kparams = jax.random.split(key, 4)

    # ---- Pallas-path test (XZP): partial last batch block, unpadded C < 128 ----
    batch, feat_dim, num_class = 208, 64, 48
    x = jax.random.normal(kx, (batch, feat_dim), jnp.float32)
    z = jax.random.normal(kz, (batch, feat_dim), jnp.float32)
    p = jax.nn.softmax(
        jax.random.normal(kp, (batch, num_class), jnp.float32), axis=-1)
    params = init_params(kparams, "XZP", feat_dim, num_class)
    ref = _reference(x, z, p, params)

    # f32 compute: validates plumbing (cdiv grid, masked partial block, no pad).
    out_f32 = jax.block_until_ready(
        cluster_aided_classifier_forward(
            x, z, p, params, compute_dtype=jnp.float32,
            use_pallas=True, max_batch_tile=64))
    assert out_f32.shape == (batch, num_class)
    assert jnp.allclose(out_f32, ref, atol=2e-2, rtol=2e-2), "f32 pallas mismatch"

    # Default bf16 compute (halved HBM traffic); f32 accumulation -> loose tol.
    out_bf16 = jax.block_until_ready(
        cluster_aided_classifier_forward(x, z, p, params, use_pallas=True))
    assert out_bf16.shape == (batch, num_class)
    assert jnp.allclose(out_bf16, ref, atol=7e-2, rtol=7e-2), "bf16 pallas mismatch"

    # ---- Pallas-path test (XZ, p=None): auto tile selection, >= 2 grid steps ----
    params_xz = init_params(kparams, "XZ", feat_dim, num_class)
    ref_xz = _reference(x, z, None, params_xz)
    out_xz = jax.block_until_ready(
        cluster_aided_classifier_forward(
            x, z, None, params_xz, compute_dtype=jnp.float32, use_pallas=True))
    assert out_xz.shape == (batch, num_class)
    assert jnp.allclose(out_xz, ref_xz, atol=2e-2, rtol=2e-2), "XZ pallas mismatch"

    # ---- Tiny shapes: auto-dispatch takes the fused XLA path (no pallas launch) ----
    xs, zs = x[:8, :32], z[:8, :32]
    ps = p[:8, :16]
    params_small = init_params(kparams, "XZP", 32, 16)
    out_small = jax.block_until_ready(
        cluster_aided_classifier_forward(
            xs, zs, ps, params_small, compute_dtype=jnp.float32))
    ref_small = _reference(xs, zs, ps, params_small)
    assert out_small.shape == (8, 16)
    assert jnp.allclose(out_small, ref_small, atol=1e-3, rtol=1e-3), "xla path mismatch"

    print("KERNEL_OK")
</pallas_src>

<mosaic_0001>
module attributes {stable_mosaic.version = 11 : i64} {
  func.func @kernel(%arg0: i32, %arg1: memref<64x64xf32, #tpu.memory_space<vmem>>, %arg2: memref<64x64xf32, #tpu.memory_space<vmem>>, %arg3: memref<64x48xf32, #tpu.memory_space<vmem>>, %arg4: memref<64x48xf32, #tpu.memory_space<vmem>>, %arg5: memref<64x48xf32, #tpu.memory_space<vmem>>, %arg6: memref<48x48xf32, #tpu.memory_space<vmem>>, %arg7: memref<1x48xf32, #tpu.memory_space<vmem>>, %arg8: memref<64x48xf32, #tpu.memory_space<vmem>>) attributes {dimension_semantics = [#tpu.dimension_semantics<parallel>], iteration_bounds = array<i64: 4>, scalar_prefetch = 0 : i64, scratch_operands = 0 : i64, tpu.core_type = #tpu.core_type<tc>, window_params = [{transform_indices = @transform_0, window_bounds = array<i64: 64, 64>}, {transform_indices = @transform_1, window_bounds = array<i64: 64, 64>}, {transform_indices = @transform_2, window_bounds = array<i64: 64, 48>}, {pipeline_mode = #tpu.pipeline_mode<synchronous>, transform_indices = @transform_3, window_bounds = array<i64: 64, 48>}, {pipeline_mode = #tpu.pipeline_mode<synchronous>, transform_indices = @transform_4, window_bounds = array<i64: 64, 48>}, {pipeline_mode = #tpu.pipeline_mode<synchronous>, transform_indices = @transform_5, window_bounds = array<i64: 48, 48>}, {pipeline_mode = #tpu.pipeline_mode<synchronous>, transform_indices = @transform_6, window_bounds = array<i64: 1, 48>}, {transform_indices = @transform_7, window_bounds = array<i64: 64, 48>}]} {
    %c0 = arith.constant 0 : index
    %c0_0 = arith.constant 0 : index
    %0 = vector.load %arg1[%c0, %c0_0] : memref<64x64xf32, #tpu.memory_space<vmem>>, vector<64x64xf32>
    %c0_1 = arith.constant 0 : index
    %c0_2 = arith.constant 0 : index
    %1 = vector.load %arg4[%c0_1, %c0_2] : memref<64x48xf32, #tpu.memory_space<vmem>>, vector<64x48xf32>
    %cst = arith.constant dense<0.000000e+00> : vector<64x48xf32>
    %2 = tpu.matmul %0, %1, %cst {dimension_numbers = #tpu.dot_dimension_numbers<[1], [0], [0], [1], [0, 0, 1, 1], [], []>} : vector<64x64xf32>, vector<64x48xf32>, vector<64x48xf32> -> vector<64x48xf32>
    %c0_3 = arith.constant 0 : index
    %c0_4 = arith.constant 0 : index
    %3 = vector.load %arg2[%c0_3, %c0_4] : memref<64x64xf32, #tpu.memory_space<vmem>>, vector<64x64xf32>
    %c0_5 = arith.constant 0 : index
    %c0_6 = arith.constant 0 : index
    %4 = vector.load %arg5[%c0_5, %c0_6] : memref<64x48xf32, #tpu.memory_space<vmem>>, vector<64x48xf32>
    %cst_7 = arith.constant dense<0.000000e+00> : vector<64x48xf32>
    %5 = tpu.matmul %3, %4, %cst_7 {dimension_numbers = #tpu.dot_dimension_numbers<[1], [0], [0], [1], [0, 0, 1, 1], [], []>} : vector<64x64xf32>, vector<64x48xf32>, vector<64x48xf32> -> vector<64x48xf32>
    %6 = arith.addf %2, %5 : vector<64x48xf32>
    %c0_8 = arith.constant 0 : index
    %c0_9 = arith.constant 0 : index
    %7 = vector.load %arg3[%c0_8, %c0_9] : memref<64x48xf32, #tpu.memory_space<vmem>>, vector<64x48xf32>
    %c0_10 = arith.constant 0 : index
    %c0_11 = arith.constant 0 : index
    %8 = vector.load %arg6[%c0_10, %c0_11] : memref<48x48xf32, #tpu.memory_space<vmem>>, vector<48x48xf32>
    %cst_12 = arith.constant dense<0.000000e+00> : vector<64x48xf32>
    %9 = tpu.matmul %7, %8, %cst_12 {dimension_numbers = #tpu.dot_dimension_numbers<[1], [0], [0], [1], [0, 0, 1, 1], [], []>} : vector<64x48xf32>, vector<48x48xf32>, vector<64x48xf32> -> vector<64x48xf32>
    %10 = arith.addf %6, %9 : vector<64x48xf32>
    %c0_13 = arith.constant 0 : index
    %c0_14 = arith.constant 0 : index
    %11 = vector.load %arg7[%c0_13, %c0_14] : memref<1x48xf32, #tpu.memory_space<vmem>>, vector<1x48xf32>
    %12 = vector.broadcast %11 : vector<1x48xf32> to vector<64x48xf32>
    %13 = arith.addf %10, %12 : vector<64x48xf32>
    %c0_15 = arith.constant 0 : index
    %c0_16 = arith.constant 0 : index
    %14 = vector.load %arg8[%c0_15, %c0_16] : memref<64x48xf32, #tpu.memory_space<vmem>>, vector<64x48xf32>
    tpu.vector_store %arg8[%c0_15, %c0_16], %13 {strides = array<i32>} : memref<64x48xf32, #tpu.memory_space<vmem>>, vector<64x48xf32>,
    return
  }
  func.func @transform_0(%arg0: i32) -> (i32, i32) {
    %c0_i32 = arith.constant 0 : i32
    %c0_i32_0 = arith.constant 0 : i32
    return %arg0, %c0_i32 : i32, i32
  }
  func.func @transform_1(%arg0: i32) -> (i32, i32) {
    %c0_i32 = arith.constant 0 : i32
    %c0_i32_0 = arith.constant 0 : i32
    return %arg0, %c0_i32 : i32, i32
  }
  func.func @transform_2(%arg0: i32) -> (i32, i32) {
    %c0_i32 = arith.constant 0 : i32
    %c0_i32_0 = arith.constant 0 : i32
    return %arg0, %c0_i32 : i32, i32
  }
  func.func @transform_3(%arg0: i32) -> (i32, i32) {
    %c0_i32 = arith.constant 0 : i32
    %c0_i32_0 = arith.constant 0 : i32
    %c0_i32_1 = arith.constant 0 : i32
    return %c0_i32, %c0_i32_0 : i32, i32
  }
  func.func @transform_4(%arg0: i32) -> (i32, i32) {
    %c0_i32 = arith.constant 0 : i32
    %c0_i32_0 = arith.constant 0 : i32
    %c0_i32_1 = arith.constant 0 : i32
    return %c0_i32, %c0_i32_0 : i32, i32
  }
  func.func @transform_5(%arg0: i32) -> (i32, i32) {
    %c0_i32 = arith.constant 0 : i32
    %c0_i32_0 = arith.constant 0 : i32
    %c0_i32_1 = arith.constant 0 : i32
    return %c0_i32, %c0_i32_0 : i32, i32
  }
  func.func @transform_6(%arg0: i32) -> (i32, i32) {
    %c0_i32 = arith.constant 0 : i32
    %c0_i32_0 = arith.constant 0 : i32
    %c0_i32_1 = arith.constant 0 : i32
    return %c0_i32, %c0_i32_0 : i32, i32
  }
  func.func @transform_7(%arg0: i32) -> (i32, i32) {
    %c0_i32 = arith.constant 0 : i32
    %c0_i32_0 = arith.constant 0 : i32
    return %arg0, %c0_i32 : i32, i32
  }
}

</mosaic_0001>

<bundles_post_ra>
// kernel: tpu_custom_call.1
= control target key start
LH: loop header
LB: loop body
LE: loop exit
PB: predicated region body
PF: predicated region fallthrough
CT: control target
= control target key end

     0   :  { %s1217_s24 = smov 0   ;;  %s1219_s25 = smov 0   ;;  %s1495_s0 = inlined_call_operand.vmem [shape: f32[208,64], index: 0, kind: input, shape index: {}]   ;;  %s1496_s1 = inlined_call_operand.vmem [shape: f32[208,64], index: 1, kind: input, shape index: {}]   ;;  %s1497_s2 = inlined_call_operand.vmem [shape: f32[208,48], index: 2, kind: input, shape index: {}]   ;;  %s1498_s3 = inlined_call_operand.vmem [shape: f32[64,48], index: 3, kind: input, shape index: {}]   ;;  %s1499_s4 = inlined_call_operand.vmem [shape: f32[64,48], index: 4, kind: input, shape index: {}]   ;;  %s1500_s5 = inlined_call_operand.vmem [shape: f32[48,48], index: 5, kind: input, shape index: {}]   ;;  %s1501_s6 = inlined_call_operand.vmem [shape: f32[1,48], index: 6, kind: input, shape index: {}]   ;;  %s1502_s7 = inlined_call_operand.vmem [shape: f32[208,48], index: 7, kind: output, shape index: {}]  }
   0x1   :  { %s1221_s26 = smov 0  }
   0x2 LB: > { %s1230_s27 = sadd.s32 4294967295, %s1143_s26   ;;  %s1232_s28 = sadd.s32 1, %s1143_s26   ;;  %s1143_s26 = sphi %s1221_s26, %s1510_s26   ;;  %s1139_s25 = sphi %s1219_s25, %s1509_s25   ;;  %s1135_s24 = sphi %s1217_s24, %s1508_s24  }
   0x3   : > { %s183_s29 = ssub.s32 %s1143_s26, %s1232_s28  ;;  %s186_s30 = sadd.s32 1, %s1139_s25 }
   0x4   : > { %p184_p0 = scmp.eq.s32.totalorder %s183_s29, 0  ;;  %p196_p1 = scmp.ne.s32.totalorder %s1139_s25, %s1135_s24 }
   0x5   : > { %p197_p2 = scmp.eq.s32.totalorder %s1230_s27, 3  ;;  %p926_p3 = scmp.ge.s32.totalorder %s1143_s26, 1 }
   0x6   : > { %s1240_s8 = scalar_select %p184_p0, %s1139_s25, %s186_s30  }
   0x7   : > { %p1242_p4 = por %p197_p2, %p196_p1  ;;  %p284_p5 = scmp.lt.s32.totalorder %s1143_s26, 5 }
   0x9   : > { %p285_p6 = pnand %p926_p3, %p284_p5 }
   0xa   : > { %s1260_s16 = sshll.u32 (!%p285_p6), %s1230_s27, 3 }
   0xb   : > { %288 = sbr.rel (%p285_p6) target bundleno = 256 (0x100), region = 48  ;;  %p342_p7 = scmp.lt.s32.totalorder (!%p285_p6), %s1260_s16, 25 }
  0x10   : > { %v415_v0 = vld [vmem:[%s1499_s4 + $0x38] sm:$0xff]  ;;  %v1257_v2 = vld [vmem:[%s1500_s5 + $0x28] sm:$0xff]  ;;  %v414_v3 = vld [vmem:[%s1499_s4 + $0x30] sm:$0xff]  ;;  %s343_s12 = scalar_select %p342_p7, %s1260_s16, 25  ;;  %vm561_vm0 = vcmask 392192   ;;  %vm416_vm1 = vcmask 523264  }
  0x11   : > { %v1252_v1 = vld [vmem:[%s1498_s3 + $0x38] sm:$0xff]  ;;  %449 = vmatpush.msra.mxu0 %v415_v0  ;;  %978 = vmatpush.msra.mxu3 %v415_v0  ;;  %v1268_v4 = vld [vmem:[%s1498_s3 + $0x30] sm:$0xff]  ;;  %v1273_v5 = vld [vmem:[%s1500_s5 + $0x20] sm:$0xff] }
  0x12   : > { %514 = vmatpush.msra.mxu1 %v1252_v1  ;;  %596 = vmatpush.msra.mxu2 %v1257_v2  ;;  %v413_v6 = vld [vmem:[%s1499_s4 + $0x28] sm:$0xff]  ;;  %v1287_v8 = vld [vmem:[%s1500_s5 + $0x18] sm:$0xff]  ;;  %v412_v9 = vld [vmem:[%s1499_s4 + $0x20] sm:$0xff]  ;;  %s929_s20 = sshll.u32 %s343_s12, 3 }
  0x13   : > { %450 = vmatpush.msra.mxu0 %v414_v3  ;;  %979 = vmatpush.msra.mxu3 %v414_v3  ;;  %v397_v7 = vld [vmem:[%s1498_s3 + $0x28] sm:$0xff]  ;;  %v396_v10 = vld [vmem:[%s1498_s3 + $0x20] sm:$0xff]  ;;  %v1301_v11 = vld [vmem:[%s1500_s5 + $0x10] sm:$0xff]  ;;  %s1318_s12 = scalar_lea.vmem %s1497_s2, %s929_s20  ;;  %s1343_s10 = scalar_lea.vmem %s1496_s1, %s929_s20 }
  0x14   : > { %515 = vmatpush.msra.mxu1 %v1268_v4  ;;  %597 = vmatpush.msra.mxu2 %v1273_v5  ;;  %v411_v12 = vld [vmem:[%s1499_s4 + $0x18] sm:$0xff]  ;;  %v1313_v14 = vld [vmem:[%s1500_s5 + $0x8] sm:$0xff]  ;;  %v410_v15 = vld [vmem:[%s1499_s4 + $0x10] sm:$0xff]  ;;  %s1352_s17 = scalar_lea.vmem %s1495_s0, %s929_s20  ;;  %s334_s20 = sand.u32 1, %s1135_s24  }
  0x15   : > { %451 = vmatpush.msra.mxu0 %v413_v6  ;;  %980 = vmatpush.msra.mxu3 %v413_v6  ;;  %v395_v13 = vld [vmem:[%s1498_s3 + $0x18] sm:$0xff]  ;;  %v394_v16 = vld [vmem:[%s1498_s3 + $0x10] sm:$0xff]  ;;  %v1330_v17 = vld [vmem:[%s1500_s5] sm:$0xff]  ;;  %s927_s21 = sshll.u32 %s334_s20, 6  ;;  %s663_s24 = ssub.s32 (%p1242_p4), 26, %s1260_s16 }
  0x16   : > { %516 = vmatpush.msra.mxu1 %v397_v7  ;;  %598 = vmatpush.msra.mxu2 %v1287_v8  ;;  %v547_v18 = vld [vmem:[%s1318_s12] sm:$0xff]  ;;  %v409_v19 = vld [vmem:[%s1499_s4 + $0x8] sm:$0xff]  ;;  %v406_v24 = vld [vmem:[%s1343_s10 + $0x30] sm:$0xff]  ;;  %s1416_s26 = scalar_lea.vmem [#allocation2], %s927_s21   ;;  %p664_p8 = scmp.lt.s32.totalorder (%p1242_p4), %s663_s24, 8 }
  0x17   : > { %452 = vmatpush.msra.mxu0 %v412_v9  ;;  %981 = vmatpush.msra.mxu3 %v412_v9  ;;  %v393_v20 = vld [vmem:[%s1498_s3 + $0x8] sm:$0xff]  ;;  %v408_v21 = vld [vmem:[%s1499_s4] sm:$0xff]  ;;  %v407_v28 = vld [vmem:[%s1343_s10 + $0x38] sm:$0xff] }
  0x18   : > { %517 = vmatpush.msra.mxu1 %v396_v10  ;;  %599 = vmatpush.msra.mxu2 %v1301_v11  ;;  %v392_v22 = vld [vmem:[%s1498_s3] sm:$0xff]  ;;  %v548_v26 = vld [vmem:[%s1318_s12 + $0x8] sm:$0xff]  ;;  %v549_v30 = vld [vmem:[%s1318_s12 + $0x10] sm:$0xff] }
  0x19   : > { %453 = vmatpush.msra.mxu0 %v411_v12  ;;  %982 = vmatpush.msra.mxu3 %v411_v12  ;;  %v400_v23 = vld [vmem:[%s1343_s10] sm:$0xff]  ;;  %v401_v27 = vld [vmem:[%s1343_s10 + $0x8] sm:$0xff]  ;;  %v402_v31 = vld [vmem:[%s1343_s10 + $0x10] sm:$0xff] }
  0x1a   : > { %518 = vmatpush.msra.mxu1 %v395_v13  ;;  %600 = vmatpush.msra.mxu2 %v1313_v14  ;;  %v384_v25 = vld [vmem:[%s1352_s17] sm:$0xff]  ;;  %v385_v29 = vld [vmem:[%s1352_s17 + $0x8] sm:$0xff]  ;;  %v390_v32 = vld [vmem:[%s1352_s17 + $0x30] sm:$0xff] }
  0x1b   : > { %454 = vmatpush.msra.mxu0 %v410_v15  ;;  %983 = vmatpush.msra.mxu3 %v410_v15  ;;  %v386_v33 = vld [vmem:[%s1352_s17 + $0x10] sm:$0xff]  ;;  %v550_v34 = vld [vmem:[%s1318_s12 + $0x18] sm:$0xff]  ;;  %v551_v38 = vld [vmem:[%s1318_s12 + $0x20] sm:$0xff] }
  0x1c   : > { %519 = vmatpush.msra.mxu1 %v394_v16  ;;  %601 = vmatpush.msra.mxu2 %v1330_v17  ;;  %v403_v35 = vld [vmem:[%s1343_s10 + $0x18] sm:$0xff]  ;;  %v404_v39 = vld [vmem:[%s1343_s10 + $0x20] sm:$0xff]  ;;  %v552_v42 = vld [vmem:[%s1318_s12 + $0x28] sm:$0xff] }
  0x1d   : > { %950 = vmatmul.msk.f32.vlgmr.msra.gmra.mxu2 %vm561_vm0, %v547_v18  ;;  %455 = vmatpush.msra.mxu0 %v409_v19  ;;  %v391_v36 = vld [vmem:[%s1352_s17 + $0x38] sm:$0xff]  ;;  %v388_v41 = vld [vmem:[%s1352_s17 + $0x20] sm:$0xff]  ;;  %v405_v43 = vld [vmem:[%s1343_s10 + $0x28] sm:$0xff] }
  0x1e   : > { %984 = vmatpush.msra.mxu3 %v409_v19  ;;  %520 = vmatpush.msra.mxu1 %v393_v20  ;;  %v387_v37 = vld [vmem:[%s1352_s17 + $0x18] sm:$0xff]  ;;  %v389_v44 = vld [vmem:[%s1352_s17 + $0x28] sm:$0xff]  ;;  %v553_v45 = vld [vmem:[%s1318_s12 + $0x30] sm:$0xff] }
  0x1f   : > { %456 = vmatpush.msra.mxu0 %v408_v21  ;;  %v554_v40 = vld [vmem:[%s1318_s12 + $0x38] sm:$0xff]  ;;  %v1088_v50 = vld [vmem:[%s1501_s6] ss:$0 sm:$0xff]  ;;  %s975_s12 = sshll.u32 (%p1242_p4), %s1230_s27, 6 }
  0x20   : > { %985 = vmatpush.msra.mxu3 %v408_v21  ;;  %521 = vmatpush.msra.mxu1 %v392_v22  ;;  %s1441_s10 = scalar_lea.vmem (%p1242_p4), %s1502_s7, %s975_s12  }
  0x21   : > { %934 = vmatmul.msk.f32.vlgmr.msra.gmra.mxu0 %vm416_vm1, %v400_v23  ;;  %940 = vmatmul.msk.f32.vlgmr.msra.gmra.mxu3 %vm416_vm1, %v406_v24 }
  0x22   : > { %942 = vmatmul.msk.f32.vlgmr.msra.gmra.mxu1 %vm416_vm1, %v384_v25  ;;  %986 = vmatpush.msrb.mxu3 %v1252_v1 }
  0x24   : > { %987 = vmatpush.msrb.mxu3 %v1268_v4 }
  0x25   : > { %951 = vmatmul.msk.f32.gmra.mxu2 %vm561_vm0, %v548_v26 }
  0x26   : > { %988 = vmatpush.msrb.mxu3 %v397_v7 }
  0x28   : > { %989 = vmatpush.msrb.mxu3 %v396_v10 }
  0x29   : > { %935 = vmatmul.msk.f32.gmra.mxu0 %vm416_vm1, %v401_v27  ;;  %941 = vmatmul.msk.f32.gmra.mxu3 %vm416_vm1, %v407_v28 }
  0x2a   : > { %943 = vmatmul.msk.f32.gmra.mxu1 %vm416_vm1, %v385_v29  ;;  %990 = vmatpush.msrb.mxu3 %v395_v13 }
  0x2c   : > { %991 = vmatpush.msrb.mxu3 %v394_v16 }
  0x2d   : > { %952 = vmatmul.msk.f32.gmra.mxu2 %vm561_vm0, %v549_v30 }
  0x2e   : > { %992 = vmatpush.msrb.mxu3 %v393_v20 }
  0x30   : > { %993 = vmatpush.msrb.mxu3 %v392_v22 }
  0x31   : > { %936 = vmatmul.msk.f32.gmra.mxu0 %vm416_vm1, %v402_v31  ;;  %948 = vmatmul.msk.f32.vlgmr.msrb.gmra.mxu3 %vm416_vm1, %v390_v32 }
  0x32   : > { %944 = vmatmul.msk.f32.gmra.mxu1 %vm416_vm1, %v386_v33  ;;  %994 = vmatpush.msra.mxu3 %v1257_v2 }
  0x34   : > { %995 = vmatpush.msra.mxu3 %v1273_v5 }
  0x35   : > { %953 = vmatmul.msk.f32.gmra.mxu2 %vm561_vm0, %v550_v34 }
  0x36   : > { %996 = vmatpush.msra.mxu3 %v1287_v8 }
  0x38   : > { %997 = vmatpush.msra.mxu3 %v1301_v11 }
  0x39   : > { %937 = vmatmul.msk.f32.gmra.mxu0 %vm416_vm1, %v403_v35  ;;  %949 = vmatmul.msk.f32.gmra.mxu3 %vm416_vm1, %v391_v36 }
  0x3a   : > { %945 = vmatmul.msk.f32.gmra.mxu1 %vm416_vm1, %v387_v37  ;;  %998 = vmatpush.msra.mxu3 %v1313_v14 }
  0x3c   : > { %999 = vmatpush.msra.mxu3 %v1330_v17 }
  0x3d   : > { %954 = vmatmul.msk.f32.gmra.mxu2 %vm561_vm0, %v551_v38 }
  0x41   : > { %938 = vmatmul.msk.f32.gmra.mxu0 %vm416_vm1, %v404_v39  ;;  %957 = vmatmul.msk.f32.vlgmr.msra.gmra.mxu3 %vm561_vm0, %v554_v40 }
  0x42   : > { %946 = vmatmul.msk.f32.gmra.mxu1 %vm416_vm1, %v388_v41 }
  0x45   : > { %955 = vmatmul.msk.f32.gmra.mxu2 %vm561_vm0, %v552_v42 }
  0x49   : > { %939 = vmatmul.msk.f32.gmra.mxu0 %vm416_vm1, %v405_v43 }
  0x4a   : > { %947 = vmatmul.msk.f32.gmra.mxu1 %vm416_vm1, %v389_v44 }
  0x4d   : > { %956 = vmatmul.msk.f32.gmra.mxu2 %vm561_vm0, %v553_v45 }
  0x9e   : > { %v458_v46 = vpop.f32.mrf.mxu0 }
  0x9f   : > { %v523_v47 = vpop.f32.mrf.mxu1 }
  0xa0   : > { %v524_v48 = vadd.f32 %v523_v47, %v458_v46  ;;  %v603_v49 = vpop.f32.mrf.mxu2 }
  0xa2   : > { %v627_v51 = vadd.f32 %v603_v49, %v524_v48 }
  0xa4   : > { %v639_v52 = vadd.f32 %v1088_v50, %v627_v51  ;;  %v476_v53 = vpop.f32.mrf.mxu3 }
  0xa6   : > { %647 = vst.msk [vmem:[%s1416_s26] sm:$0xff] %vm561_vm0, %v639_v52  ;;  %v461_v54 = vpop.f32.mrf.mxu0 }
  0xa7   : > { %v526_v55 = vpop.f32.mrf.mxu1 }
  0xa8   : > { %v527_v56 = vadd.f32 %v526_v55, %v461_v54  ;;  %v606_v57 = vpop.f32.mrf.mxu2 }
  0xaa   : > { %v628_v58 = vadd.f32 %v606_v57, %v527_v56 }
  0xac   : > { %v640_v59 = vadd.f32 %v1088_v50, %v628_v58  ;;  %v479_v60 = vpop.f32.mrf.mxu3 }
  0xae   : > { %648 = vst.msk [vmem:[%s1416_s26 + $0x8] sm:$0xff] %vm561_vm0, %v640_v59  ;;  %v464_v61 = vpop.f32.mrf.mxu0 }
  0xaf   : > { %v529_v62 = vpop.f32.mrf.mxu1 }
  0xb0   : > { %v530_v63 = vadd.f32 %v529_v62, %v464_v61  ;;  %v609_v0 = vpop.f32.mrf.mxu2 }
  0xb2   : > { %v629_v1 = vadd.f32 %v609_v0, %v530_v63 }
  0xb4   : > { %v641_v2 = vadd.f32 %v1088_v50, %v629_v1  ;;  %v541_v3 = vpop.f32.mrf.mxu3 }
  0xb5   : > { %v542_v27 = vadd.f32 %v541_v3, %v476_v53 }
  0xb6   : > { %649 = vst.msk [vmem:[%s1416_s26 + $0x10] sm:$0xff] %vm561_vm0, %v641_v2  ;;  %v467_v4 = vpop.f32.mrf.mxu0 }
  0xb7   : > { %v532_v5 = vpop.f32.mrf.mxu1 }
  0xb8   : > { %v533_v6 = vadd.f32 %v532_v5, %v467_v4  ;;  %v612_v7 = vpop.f32.mrf.mxu2 }
  0xba   : > { %v630_v8 = vadd.f32 %v612_v7, %v533_v6 }
  0xbc   : > { %v642_v9 = vadd.f32 %v1088_v50, %v630_v8  ;;  %v544_v10 = vpop.f32.mrf.mxu3 }
  0xbd   : > { %v545_v16 = vadd.f32 %v544_v10, %v479_v60 }
  0xbe   : > { %650 = vst.msk [vmem:[%s1416_s26 + $0x18] sm:$0xff] %vm561_vm0, %v642_v9  ;;  %v470_v11 = vpop.f32.mrf.mxu0 }
  0xbf   : > { %v535_v12 = vpop.f32.mrf.mxu1 }
  0xc0   : > { %v536_v13 = vadd.f32 %v535_v12, %v470_v11  ;;  %v615_v14 = vpop.f32.mrf.mxu2 }
  0xc2   : > { %v631_v15 = vadd.f32 %v615_v14, %v536_v13 }
  0xc4   : > { %v643_v17 = vadd.f32 %v1088_v50, %v631_v15  ;;  %v624_v18 = vpop.f32.mrf.mxu3 }
  0xc5   : > { %v634_v19 = vadd.f32 %v624_v18, %v545_v16 }
  0xc6   : > { %651 = vst.msk [vmem:[%s1416_s26 + $0x20] sm:$0xff] %vm561_vm0, %v643_v17  ;;  %v473_v20 = vpop.f32.mrf.mxu0 }
  0xc7   : > { %v646_v21 = vadd.f32 %v1088_v50, %v634_v19  ;;  %v538_v22 = vpop.f32.mrf.mxu1 }
  0xc8   : > { %v539_v23 = vadd.f32 %v538_v22, %v473_v20  ;;  %v618_v24 = vpop.f32.mrf.mxu2 }
  0xc9   : > { %654 = vst.msk [vmem:[%s1416_s26 + $0x38] sm:$0xff] %vm561_vm0, %v646_v21 }
  0xca   : > { %v632_v25 = vadd.f32 %v618_v24, %v539_v23 }
  0xcc   : > { %v644_v26 = vadd.f32 %v1088_v50, %v632_v25 }
  0xce   : > { %652 = vst.msk [vmem:[%s1416_s26 + $0x28] sm:$0xff] %vm561_vm0, %v644_v26 }
  0xd0   : > { %v621_v28 = vpop.f32.mrf.mxu2 }
  0xd1   : > { %v633_v29 = vadd.f32 %v621_v28, %v542_v27  ;;  %661 = sbr.rel (!%p1242_p4) target bundleno = 256 (0x100), region = 52 }
  0xd3   : > { %v645_v30 = vadd.f32 %v1088_v50, %v633_v29 }
  0xd5   : > { %653 = vst.msk [vmem:[%s1416_s26 + $0x30] sm:$0xff] %vm561_vm0, %v645_v30 }
  0xd6   : > { %s1512_s24 = smov (!%p664_p8, %s663_s24), 8 }
  0xd7   : > { %s960_s11 = sshll.u32 %s1512_s24, 3 }
  0xd8   : > { %p963_p9 = scmp.eq.s32.totalorder %s960_s11, 0 }
  0xd9   : > { %s1447_s13 = sshrl.u32 (!%p963_p9), %s1512_s24, 3 }
  0xda   : > { %672 = sbr.rel (%p963_p9) target bundleno = 256 (0x100), region = 56  ;;  %p964_p10 = scmp.le.s32.totalorder (!%p963_p9), %s1447_s13, 0 }
  0xdf   : > { %867 = sbr.rel (%p964_p10) target bundleno = 239 (0xef), region = 138  ;;  %s1504_s27 = smov (!%p964_p10), %s1441_s10 }
  0xe0   : > { %s1505_s9 = smov (!%p964_p10), %s1416_s26  ;;  %s1456_s16 = smov (!%p964_p10), 0  }
  0xe1   : > { %s1458_s14 = smov (!%p964_p10), 0  }
  0xe4 LB: >> { %v749_v31 = vld [vmem:[%s1151_s9] sm:$0xff]  ;;  %v751_v32 = vld [vmem:[%s1151_s9 + $0x8] sm:$0xff]  ;;  %v753_v33 = vld [vmem:[%s1151_s9 + $0x10] sm:$0xff]  ;;  %s765_s15 = sadd.s32 1, %s1155_s16  ;;  %s743_s14 = sadd.s32 1, %s1159_s14   ;;  %s1159_s14 = sphi %s1458_s14, %s743_s14   ;;  %s1155_s16 = sphi %s1456_s16, %s1507_s16   ;;  %s1151_s9 = sphi %s1505_s9, %s770_s9   ;;  %s1147_s27 = sphi %s1504_s27, %s1506_s27  }
  0xe5   : >> { %750 = vst [vmem:[%s1147_s27] sm:$0xff] %v749_v31  ;;  %v755_v34 = vld [vmem:[%s1151_s9 + $0x18] sm:$0xff]  ;;  %p766_p11 = scmp.ge.s32.totalorder %s765_s15, %s1447_s13  ;;  %v757_v35 = vld [vmem:[%s1151_s9 + $0x20] sm:$0xff]  ;;  %v759_v36 = vld [vmem:[%s1151_s9 + $0x28] sm:$0xff]  ;;  %p742_p12 = scmp.ge.s32.totalorder %s743_s14, %s1447_s13 }
  0xe6   : >> { %752 = vst [vmem:[%s1147_s27 + $0x8] sm:$0xff] %v751_v32  ;;  %v761_v37 = vld [vmem:[%s1151_s9 + $0x30] sm:$0xff]  ;;  %v763_v38 = vld [vmem:[%s1151_s9 + $0x38] sm:$0xff] }
  0xe7   : >> { %754 = vst [vmem:[%s1147_s27 + $0x10] sm:$0xff] %v753_v33  ;;  %s1514_s15 = smov (%p766_p11, %s765_s15), 0 }
  0xe8   : >> { %756 = vst [vmem:[%s1147_s27 + $0x18] sm:$0xff] %v755_v34  ;;  %s965_s17 = sshll.u32 %s1514_s15, 6  ;;  %s1507_s16 = smov %s1514_s15 }
  0xe9   : >> { %758 = vst [vmem:[%s1147_s27 + $0x20] sm:$0xff] %v757_v35  ;;  %s770_s9 = scalar_lea.vmem %s1416_s26, %s965_s17 [#allocation2]   ;;  %s771_s18 = scalar_lea.vmem %s1441_s10, %s965_s17  }
  0xea   : >> { %760 = vst [vmem:[%s1147_s27 + $0x28] sm:$0xff] %v759_v36  ;;  %745 = sbr.rel (!%p742_p12) target bundleno = 228 (0xe4), region = 144 }
  0xeb   : >> { %762 = vst [vmem:[%s1147_s27 + $0x30] sm:$0xff] %v761_v37 }
  0xec   : >> { %764 = vst [vmem:[%s1147_s27 + $0x38] sm:$0xff] %v763_v38  ;;  %s1506_s27 = smov %s771_s18 }
  0xef PF: > { %s1477_s19 = sand.u32 7, %s1512_s24   ;;  %s976_s20 = sshll.u32 %s1447_s13, 6 }
  0xf0   : > { %s776_s21 = scalar_lea.vmem %s1416_s26, %s976_s20 [#allocation2]   ;;  %s778_s22 = scalar_lea.vmem %s1441_s10, %s976_s20  }
  0xf1   : > { %p970_p13 = scmp.le.s32.totalorder %s1477_s19, 0 }
  0xf2   : > { %s1161_s23 = smov (!%p970_p13), %s778_s22   ;;  %s1165_s12 = smov (!%p970_p13), %s776_s21  }
  0xf3   : > { %881 = sbr.rel (%p970_p13) target bundleno = 256 (0x100), region = 149  ;;  %s1169_s29 = smov (!%p970_p13), 0  }
  0xf4   : > { %s1173_s30 = smov (!%p970_p13), 0  }
  0xf8 LB: >> { %v788_v39 = vld [vmem:[%s1167_s12] sm:$0xff]  ;;  %s790_s24 = sadd.s32 1, %s1171_s29  ;;  %s782_s30 = sadd.s32 1, %s1175_s30   ;;  %s1175_s30 = sphi %s1173_s30, %s782_s30   ;;  %s1171_s29 = sphi %s1169_s29, %s1170_s29   ;;  %s1167_s12 = sphi %s1165_s12, %s795_s12   ;;  %s1163_s23 = sphi %s1161_s23, %s796_s23  }
  0xf9   : >> { %789 = vst [vmem:[%s1163_s23] sm:$0xff] %v788_v39  ;;  %p791_p0 = scmp.ge.s32.totalorder %s790_s24, %s1477_s19  ;;  %p781_p1 = scmp.ge.s32.totalorder %s782_s30, %s1477_s19 }
  0xfb   : >> { %s1516_s24 = smov (%p791_p0, %s790_s24), 0  ;;  %784 = sbr.rel (!%p781_p1) target bundleno = 248 (0xf8), region = 155 }
  0xfc   : >> { %s971_s26 = sshll.u32 %s1516_s24, 3  ;;  %s1170_s29 = smov %s1516_s24  }
  0xfd   : >> { %s795_s12 = scalar_lea.vmem %s776_s21, %s971_s26 [#allocation2]   ;;  %s796_s23 = scalar_lea.vmem %s778_s22, %s971_s26  }
 0x100 PF: > { %p14_p2 = scmp.ge.s32.totalorder %s1232_s28, 6   ;;  %s1508_s24 = smov %s1139_s25 }
 0x101   : > { %s1509_s25 = smov %s1240_s8  ;;  %s1510_s26 = smov %s1232_s28 }
 0x102   :  { %16 = sbr.rel (!%p14_p2) target bundleno = 2 (0x2), region = 166 }

</bundles_post_ra>
